<compile_context>
chip_gen: v6e
topology: v6e:2x2x1
jax: 0.10.0
libtpu: 0.0.40
codegen_flags: <defaults>
</compile_context>

<pallas_src>
import jax
import jax.numpy as jnp
from jax import lax
from jax.experimental import pallas as pl
from jax.experimental.pallas import tpu as pltpu

INPUT_SIZE = 28   # matches `input_size = 28` in the PyTorch script
HIDDEN = 64
NUM_CLASSES = 10
C_PAD = 128       # lane-dense padded logits width


def lstm_fc_kernel(xproj_ref, bias_ref, whh_ref, fcw_ref, fcb_ref, o_ref):
    """Recurrent part of the LSTM + final Linear for one batch tile.

    xproj_ref : (T, TB, 4H) bf16 -- precomputed x @ W_ih^T (no bias)
    bias_ref  : (1, 4H)     f32  -- b_ih + b_hh (added here in f32)
    whh_ref   : (H, 4H)     bf16 -- transposed weight_hh_l0 (gate order i,f,g,o)
    fcw_ref   : (H, C_PAD)  bf16 -- transposed fc weight, zero-padded lanes
    fcb_ref   : (1, C_PAD)  f32  -- fc bias, zero-padded lanes
    o_ref     : (TB, C_PAD) f32  -- padded logits for this batch tile
    """
    T, TB, G = xproj_ref.shape
    H = G // 4

    whh = whh_ref[...]      # (H, 4H) bf16, resident across the recurrence
    bias = bias_ref[...]    # (1, 4H) f32

    # Lanes [2H, 3H) are the "g" (cell candidate) gate -> tanh; the i, f, o
    # gates are sigmoid.  sigmoid(x) = 0.5*(1 + tanh(x/2)), so we pre-scale
    # the sigmoid lanes by 0.5 (VPU), run a SINGLE tanh over the whole
    # (TB, 4H) tile (EUP, the serial-critical unit), and fix up the three
    # sigmoid gate slices afterwards (VPU).  pre_scale is hoisted.
    lane = lax.broadcasted_iota(jnp.int32, (TB, G), 1)
    g_mask = (lane >= 2 * H) & (lane < 3 * H)
    pre_scale = jnp.where(g_mask, jnp.float32(1.0), jnp.float32(0.5))

    def gate_act_split(gates):
        t = jnp.tanh(gates * pre_scale)                 # one EUP pass
        i_g = 0.5 * t[:, 0 * H:1 * H] + 0.5             # sigmoid fix-up (VPU)
        f_g = 0.5 * t[:, 1 * H:2 * H] + 0.5
        g_g = t[:, 2 * H:3 * H]                         # tanh gate, as-is
        o_g = 0.5 * t[:, 3 * H:4 * H] + 0.5
        return i_g, f_g, g_g, o_g

    # --- peeled t = 0: h0 == 0 and c0 == 0, so the recurrent matmul and the
    # f*c term vanish. ---
    i0, _, g0, o0 = gate_act_split(xproj_ref[0].astype(jnp.float32) + bias)
    c = i0 * g0
    h = o0 * jnp.tanh(c)

    def step(t, carry):
        h, c = carry
        # Only the recurrent matmul sits on the serial critical path; the
        # input projection was hoisted into xproj (bf16) and bias stays f32.
        gates = (xproj_ref[t].astype(jnp.float32) + bias
                 + jnp.dot(h.astype(jnp.bfloat16), whh,
                           preferred_element_type=jnp.float32))
        i_g, f_g, g_g, o_g = gate_act_split(gates)
        c_new = f_g * c + i_g * g_g
        h_new = o_g * jnp.tanh(c_new)
        return (h_new, c_new)

    # T is small and static: fully unroll the remaining T-1 steps so the LLO
    # scheduler can overlap the next step's MXU push with EUP/VPU work.
    h_last, _ = lax.fori_loop(1, T, step, (h, c), unroll=True)

    # Lane-dense (TB, 128) store — no masked partial stores.
    o_ref[...] = (
        jnp.dot(h_last.astype(jnp.bfloat16), fcw_ref[...],
                preferred_element_type=jnp.float32)
        + fcb_ref[...]
    ).astype(o_ref.dtype)


def _round_up(n, m):
    return ((n + m - 1) // m) * m


@jax.jit
def rnn_forward(x, w_ih, w_hh, b_ih, b_hh, fc_w, fc_b):
    """Equivalent of RNN.forward: LSTM over x (B, T, I), fc on last hidden."""
    B, T, I = x.shape
    H = HIDDEN
    G = 4 * H

    # Batch tiling.  TB is a multiple of 16 (bf16 sublane packing of the
    # xproj tile).  For B > 16 we guarantee >= 2 grid programs so both v7x
    # TensorCores get work; TB is capped at 128 (v5e MXU width, and keeps the
    # f32 gate live-set comfortably inside the 64-vreg file).
    Bp16 = _round_up(B, 16)
    if Bp16 <= 16:
        TB = Bp16
    elif Bp16 <= 256:
        TB = _round_up((Bp16 + 1) // 2, 16)
    else:
        TB = 128
    Bp = _round_up(B, TB)

    x_p = jnp.zeros((Bp, T, I), jnp.float32).at[:B].set(x)

    # Hoist the input projection out of the recurrence.  Transpose x FIRST
    # (cheap: 28-lane array), so xproj is produced directly in (T, Bp, 4H)
    # and stored bf16 (halves the only large HBM stream).  Bias is NOT folded
    # in here — it is added in f32 inside the kernel.
    x_t = jnp.transpose(x_p, (1, 0, 2))                              # (T, Bp, I)
    xproj = jnp.dot(
        x_t.reshape(T * Bp, I).astype(jnp.bfloat16),
        jnp.transpose(w_ih).astype(jnp.bfloat16),
        preferred_element_type=jnp.float32,
    ).astype(jnp.bfloat16).reshape(T, Bp, G)                         # (T, Bp, 4H) bf16

    bias = (b_ih + b_hh).reshape(1, G).astype(jnp.float32)           # (1, 4H) f32
    whh_t = jnp.transpose(w_hh).astype(jnp.bfloat16)                 # (H, 4H) bf16

    # Lane-dense padded fc operands / output (last dim 128, not 10).
    fcw_t = jnp.zeros((H, C_PAD), jnp.bfloat16).at[:, :NUM_CLASSES].set(
        jnp.transpose(fc_w).astype(jnp.bfloat16))
    fcb_p = jnp.zeros((1, C_PAD), jnp.float32).at[0, :NUM_CLASSES].set(
        fc_b.astype(jnp.float32))

    out = pl.pallas_call(
        lstm_fc_kernel,
        out_shape=jax.ShapeDtypeStruct((Bp, C_PAD), jnp.float32),
        grid_spec=pltpu.PrefetchScalarGridSpec(
            num_scalar_prefetch=0,
            grid=(Bp // TB,),
            in_specs=[
                pl.BlockSpec((T, TB, G), lambda b: (0, b, 0)),   # xproj tile (bf16)
                pl.BlockSpec((1, G), lambda b: (0, 0)),          # f32 bias
                pl.BlockSpec((H, G), lambda b: (0, 0)),          # W_hh^T
                pl.BlockSpec((H, C_PAD), lambda b: (0, 0)),      # fc W^T (padded)
                pl.BlockSpec((1, C_PAD), lambda b: (0, 0)),      # fc bias (padded)
            ],
            out_specs=pl.BlockSpec((TB, C_PAD), lambda b: (b, 0)),
        ),
        compiler_params=pltpu.CompilerParams(
            dimension_semantics=("parallel",)),
    )(xproj, bias, whh_t, fcw_t, fcb_p)

    return out[:B, :NUM_CLASSES]


def lstm_ref(x, w_ih, w_hh, b_ih, b_hh, fc_w, fc_b):
    """Pure-JAX f32 reference reproducing torch.nn.LSTM + Linear semantics."""
    B, T, _ = x.shape
    H = HIDDEN

    def step(carry, x_t):
        h, c = carry
        gates = x_t @ w_ih.T + h @ w_hh.T + b_ih + b_hh
        i_g = jax.nn.sigmoid(gates[:, 0 * H:1 * H])
        f_g = jax.nn.sigmoid(gates[:, 1 * H:2 * H])
        g_g = jnp.tanh(gates[:, 2 * H:3 * H])
        o_g = jax.nn.sigmoid(gates[:, 3 * H:4 * H])
        c = f_g * c + i_g * g_g
        h = o_g * jnp.tanh(c)
        return (h, c), None

    h0 = jnp.zeros((B, H), jnp.float32)
    c0 = jnp.zeros((B, H), jnp.float32)
    (h_last, _), _ = lax.scan(step, (h0, c0), jnp.transpose(x, (1, 0, 2)))
    return h_last @ fc_w.T + fc_b


def init_params(key):
    """Deterministic init matching PyTorch shapes: U(-1/sqrt(H), 1/sqrt(H))."""
    k = 1.0 / jnp.sqrt(jnp.float32(HIDDEN))
    keys = jax.random.split(key, 6)
    u = lambda kk, shape: jax.random.uniform(kk, shape, jnp.float32, -k, k)
    w_ih = u(keys[0], (4 * HIDDEN, INPUT_SIZE))   # weight_ih_l0
    w_hh = u(keys[1], (4 * HIDDEN, HIDDEN))       # weight_hh_l0
    b_ih = u(keys[2], (4 * HIDDEN,))              # bias_ih_l0
    b_hh = u(keys[3], (4 * HIDDEN,))              # bias_hh_l0
    fc_w = u(keys[4], (NUM_CLASSES, HIDDEN))      # fc.weight
    fc_b = u(keys[5], (NUM_CLASSES,))             # fc.bias
    return w_ih, w_hh, b_ih, b_hh, fc_w, fc_b


if __name__ == "__main__":
    key = jax.random.PRNGKey(0)
    pkey, xkey = jax.random.split(key)
    params = init_params(pkey)

    B, T = 2, 8
    x = jax.random.normal(xkey, (B, T, INPUT_SIZE), jnp.float32)

    out = rnn_forward(x, *params)
    out = jax.block_until_ready(out)

    ref = lstm_ref(x, *params)
    assert out.shape == (B, NUM_CLASSES)
    # bf16 MXU inputs / bf16 xproj compound rounding over the T-step
    # recurrence: loosen tolerance accordingly.
    assert jnp.allclose(out, ref, atol=5e-2, rtol=5e-2)

    print("KERNEL_OK")
</pallas_src>

<mosaic_0001>
module attributes {stable_mosaic.version = 11 : i64} {
  func.func @lstm_fc_kernel(%arg0: i32, %arg1: memref<8x16x256xbf16, #tpu.memory_space<vmem>>, %arg2: memref<1x256xf32, #tpu.memory_space<vmem>>, %arg3: memref<64x256xbf16, #tpu.memory_space<vmem>>, %arg4: memref<64x128xbf16, #tpu.memory_space<vmem>>, %arg5: memref<1x128xf32, #tpu.memory_space<vmem>>, %arg6: memref<16x128xf32, #tpu.memory_space<vmem>>) attributes {dimension_semantics = [#tpu.dimension_semantics<parallel>], iteration_bounds = array<i64: 1>, scalar_prefetch = 0 : i64, scratch_operands = 0 : i64, tpu.core_type = #tpu.core_type<tc>, window_params = [{transform_indices = @transform_0, window_bounds = array<i64: 8, 16, 256>}, {pipeline_mode = #tpu.pipeline_mode<synchronous>, transform_indices = @transform_1, window_bounds = array<i64: 1, 256>}, {pipeline_mode = #tpu.pipeline_mode<synchronous>, transform_indices = @transform_2, window_bounds = array<i64: 64, 256>}, {pipeline_mode = #tpu.pipeline_mode<synchronous>, transform_indices = @transform_3, window_bounds = array<i64: 64, 128>}, {pipeline_mode = #tpu.pipeline_mode<synchronous>, transform_indices = @transform_4, window_bounds = array<i64: 1, 128>}, {transform_indices = @transform_5, window_bounds = array<i64: 16, 128>}]} {
    %c0 = arith.constant 0 : index
    %c0_0 = arith.constant 0 : index
    %0 = vector.load %arg3[%c0, %c0_0] : memref<64x256xbf16, #tpu.memory_space<vmem>>, vector<64x256xbf16>
    %c0_1 = arith.constant 0 : index
    %c0_2 = arith.constant 0 : index
    %1 = vector.load %arg2[%c0_1, %c0_2] : memref<1x256xf32, #tpu.memory_space<vmem>>, vector<1x256xf32>
    %2 = tpu.iota {dimensions = array<i32: 1>} : vector<16x256xi32>
    %c128_i32 = arith.constant 128 : i32
    %3 = vector.broadcast %c128_i32 : i32 to vector<16x256xi32>
    %4 = arith.cmpi sge, %2, %3 : vector<16x256xi32>
    %c192_i32 = arith.constant 192 : i32
    %5 = vector.broadcast %c192_i32 : i32 to vector<16x256xi32>
    %6 = arith.cmpi slt, %2, %5 : vector<16x256xi32>
    %7 = arith.andi %4, %6 : vector<16x256xi1>
    %cst = arith.constant 1.000000e+00 : f32
    %cst_3 = arith.constant 5.000000e-01 : f32
    %8 = vector.broadcast %cst : f32 to vector<16x256xf32>
    %9 = vector.broadcast %cst_3 : f32 to vector<16x256xf32>
    %10 = arith.select %7, %8, %9 : vector<16x256xi1>, vector<16x256xf32>
    %c0_4 = arith.constant 0 : index
    %c0_5 = arith.constant 0 : index
    %c0_6 = arith.constant 0 : index
    %11 = vector.load %arg1[%c0_4, %c0_5, %c0_6] : memref<8x16x256xbf16, #tpu.memory_space<vmem>>, vector<1x16x256xbf16>
    %12 = vector.shape_cast %11 : vector<1x16x256xbf16> to vector<16x256xbf16>
    %13 = arith.extf %12 : vector<16x256xbf16> to vector<16x256xf32>
    %14 = vector.broadcast %1 : vector<1x256xf32> to vector<16x256xf32>
    %15 = arith.addf %13, %14 : vector<16x256xf32>
    %16 = arith.mulf %15, %10 : vector<16x256xf32>
    %17 = math.tanh %16 : vector<16x256xf32>
    %18 = vector.extract_strided_slice %17 {offsets = [0, 0], sizes = [16, 64], strides = [1, 1]} : vector<16x256xf32> to vector<16x64xf32>
    %cst_7 = arith.constant 5.000000e-01 : f32
    %19 = vector.broadcast %cst_7 : f32 to vector<16x64xf32>
    %20 = arith.mulf %19, %18 : vector<16x64xf32>
    %cst_8 = arith.constant 5.000000e-01 : f32
    %21 = vector.broadcast %cst_8 : f32 to vector<16x64xf32>
    %22 = arith.addf %20, %21 : vector<16x64xf32>
    %23 = vector.extract_strided_slice %17 {offsets = [0, 128], sizes = [16, 64], strides = [1, 1]} : vector<16x256xf32> to vector<16x64xf32>
    %24 = vector.extract_strided_slice %17 {offsets = [0, 192], sizes = [16, 64], strides = [1, 1]} : vector<16x256xf32> to vector<16x64xf32>
    %cst_9 = arith.constant 5.000000e-01 : f32
    %25 = vector.broadcast %cst_9 : f32 to vector<16x64xf32>
    %26 = arith.mulf %25, %24 : vector<16x64xf32>
    %cst_10 = arith.constant 5.000000e-01 : f32
    %27 = vector.broadcast %cst_10 : f32 to vector<16x64xf32>
    %28 = arith.addf %26, %27 : vector<16x64xf32>
    %29 = arith.mulf %22, %23 : vector<16x64xf32>
    %30 = math.tanh %29 : vector<16x64xf32>
    %31 = arith.mulf %28, %30 : vector<16x64xf32>
    %c1_i32 = arith.constant 1 : i32
    %32 = arith.index_cast %c1_i32 : i32 to index
    %c0_11 = arith.constant 0 : index
    %c0_12 = arith.constant 0 : index
    %33 = vector.load %arg1[%32, %c0_11, %c0_12] : memref<8x16x256xbf16, #tpu.memory_space<vmem>>, vector<1x16x256xbf16>
    %34 = vector.shape_cast %33 : vector<1x16x256xbf16> to vector<16x256xbf16>
    %35 = arith.extf %34 : vector<16x256xbf16> to vector<16x256xf32>
    %36 = vector.broadcast %1 : vector<1x256xf32> to vector<16x256xf32>
    %37 = arith.addf %35, %36 : vector<16x256xf32>
    %38 = arith.truncf %31 : vector<16x64xf32> to vector<16x64xbf16>
    %cst_13 = arith.constant dense<0.000000e+00> : vector<16x256xf32>
    %39 = tpu.matmul %38, %0, %cst_13 {dimension_numbers = #tpu.dot_dimension_numbers<[1], [0], [0], [1], [0, 0, 1, 1], [], []>} : vector<16x64xbf16>, vector<64x256xbf16>, vector<16x256xf32> -> vector<16x256xf32>
    %40 = arith.addf %37, %39 : vector<16x256xf32>
    %41 = arith.mulf %40, %10 : vector<16x256xf32>
    %42 = math.tanh %41 : vector<16x256xf32>
    %43 = vector.extract_strided_slice %42 {offsets = [0, 0], sizes = [16, 64], strides = [1, 1]} : vector<16x256xf32> to vector<16x64xf32>
    %cst_14 = arith.constant 5.000000e-01 : f32
    %44 = vector.broadcast %cst_14 : f32 to vector<16x64xf32>
    %45 = arith.mulf %44, %43 : vector<16x64xf32>
    %cst_15 = arith.constant 5.000000e-01 : f32
    %46 = vector.broadcast %cst_15 : f32 to vector<16x64xf32>
    %47 = arith.addf %45, %46 : vector<16x64xf32>
    %48 = vector.extract_strided_slice %42 {offsets = [0, 64], sizes = [16, 64], strides = [1, 1]} : vector<16x256xf32> to vector<16x64xf32>
    %cst_16 = arith.constant 5.000000e-01 : f32
    %49 = vector.broadcast %cst_16 : f32 to vector<16x64xf32>
    %50 = arith.mulf %49, %48 : vector<16x64xf32>
    %cst_17 = arith.constant 5.000000e-01 : f32
    %51 = vector.broadcast %cst_17 : f32 to vector<16x64xf32>
    %52 = arith.addf %50, %51 : vector<16x64xf32>
    %53 = vector.extract_strided_slice %42 {offsets = [0, 128], sizes = [16, 64], strides = [1, 1]} : vector<16x256xf32> to vector<16x64xf32>
    %54 = vector.extract_strided_slice %42 {offsets = [0, 192], sizes = [16, 64], strides = [1, 1]} : vector<16x256xf32> to vector<16x64xf32>
    %cst_18 = arith.constant 5.000000e-01 : f32
    %55 = vector.broadcast %cst_18 : f32 to vector<16x64xf32>
    %56 = arith.mulf %55, %54 : vector<16x64xf32>
    %cst_19 = arith.constant 5.000000e-01 : f32
    %57 = vector.broadcast %cst_19 : f32 to vector<16x64xf32>
    %58 = arith.addf %56, %57 : vector<16x64xf32>
    %59 = arith.mulf %52, %29 : vector<16x64xf32>
    %60 = arith.mulf %47, %53 : vector<16x64xf32>
    %61 = arith.addf %59, %60 : vector<16x64xf32>
    %62 = math.tanh %61 : vector<16x64xf32>
    %63 = arith.mulf %58, %62 : vector<16x64xf32>
    %c2_i32 = arith.constant 2 : i32
    %64 = arith.index_cast %c2_i32 : i32 to index
    %c0_20 = arith.constant 0 : index
    %c0_21 = arith.constant 0 : index
    %65 = vector.load %arg1[%64, %c0_20, %c0_21] : memref<8x16x256xbf16, #tpu.memory_space<vmem>>, vector<1x16x256xbf16>
    %66 = vector.shape_cast %65 : vector<1x16x256xbf16> to vector<16x256xbf16>
    %67 = arith.extf %66 : vector<16x256xbf16> to vector<16x256xf32>
    %68 = vector.broadcast %1 : vector<1x256xf32> to vector<16x256xf32>
    %69 = arith.addf %67, %68 : vector<16x256xf32>
    %70 = arith.truncf %63 : vector<16x64xf32> to vector<16x64xbf16>
    %cst_22 = arith.constant dense<0.000000e+00> : vector<16x256xf32>
    %71 = tpu.matmul %70, %0, %cst_22 {dimension_numbers = #tpu.dot_dimension_numbers<[1], [0], [0], [1], [0, 0, 1, 1], [], []>} : vector<16x64xbf16>, vector<64x256xbf16>, vector<16x256xf32> -> vector<16x256xf32>
    %72 = arith.addf %69, %71 : vector<16x256xf32>
    %73 = arith.mulf %72, %10 : vector<16x256xf32>
    %74 = math.tanh %73 : vector<16x256xf32>
    %75 = vector.extract_strided_slice %74 {offsets = [0, 0], sizes = [16, 64], strides = [1, 1]} : vector<16x256xf32> to vector<16x64xf32>
    %cst_23 = arith.constant 5.000000e-01 : f32
    %76 = vector.broadcast %cst_23 : f32 to vector<16x64xf32>
    %77 = arith.mulf %76, %75 : vector<16x64xf32>
    %cst_24 = arith.constant 5.000000e-01 : f32
    %78 = vector.broadcast %cst_24 : f32 to vector<16x64xf32>
    %79 = arith.addf %77, %78 : vector<16x64xf32>
    %80 = vector.extract_strided_slice %74 {offsets = [0, 64], sizes = [16, 64], strides = [1, 1]} : vector<16x256xf32> to vector<16x64xf32>
    %cst_25 = arith.constant 5.000000e-01 : f32
    %81 = vector.broadcast %cst_25 : f32 to vector<16x64xf32>
    %82 = arith.mulf %81, %80 : vector<16x64xf32>
    %cst_26 = arith.constant 5.000000e-01 : f32
    %83 = vector.broadcast %cst_26 : f32 to vector<16x64xf32>
    %84 = arith.addf %82, %83 : vector<16x64xf32>
    %85 = vector.extract_strided_slice %74 {offsets = [0, 128], sizes = [16, 64], strides = [1, 1]} : vector<16x256xf32> to vector<16x64xf32>
    %86 = vector.extract_strided_slice %74 {offsets = [0, 192], sizes = [16, 64], strides = [1, 1]} : vector<16x256xf32> to vector<16x64xf32>
    %cst_27 = arith.constant 5.000000e-01 : f32
    %87 = vector.broadcast %cst_27 : f32 to vector<16x64xf32>
    %88 = arith.mulf %87, %86 : vector<16x64xf32>
    %cst_28 = arith.constant 5.000000e-01 : f32
    %89 = vector.broadcast %cst_28 : f32 to vector<16x64xf32>
    %90 = arith.addf %88, %89 : vector<16x64xf32>
    %91 = arith.mulf %84, %61 : vector<16x64xf32>
    %92 = arith.mulf %79, %85 : vector<16x64xf32>
    %93 = arith.addf %91, %92 : vector<16x64xf32>
    %94 = math.tanh %93 : vector<16x64xf32>
    %95 = arith.mulf %90, %94 : vector<16x64xf32>
    %c3_i32 = arith.constant 3 : i32
    %96 = arith.index_cast %c3_i32 : i32 to index
    %c0_29 = arith.constant 0 : index
    %c0_30 = arith.constant 0 : index
    %97 = vector.load %arg1[%96, %c0_29, %c0_30] : memref<8x16x256xbf16, #tpu.memory_space<vmem>>, vector<1x16x256xbf16>
    %98 = vector.shape_cast %97 : vector<1x16x256xbf16> to vector<16x256xbf16>
    %99 = arith.extf %98 : vector<16x256xbf16> to vector<16x256xf32>
    %100 = vector.broadcast %1 : vector<1x256xf32> to vector<16x256xf32>
    %101 = arith.addf %99, %100 : vector<16x256xf32>
    %102 = arith.truncf %95 : vector<16x64xf32> to vector<16x64xbf16>
    %cst_31 = arith.constant dense<0.000000e+00> : vector<16x256xf32>
    %103 = tpu.matmul %102, %0, %cst_31 {dimension_numbers = #tpu.dot_dimension_numbers<[1], [0], [0], [1], [0, 0, 1, 1], [], []>} : vector<16x64xbf16>, vector<64x256xbf16>, vector<16x256xf32> -> vector<16x256xf32>
    %104 = arith.addf %101, %103 : vector<16x256xf32>
    %105 = arith.mulf %104, %10 : vector<16x256xf32>
    %106 = math.tanh %105 : vector<16x256xf32>
    %107 = vector.extract_strided_slice %106 {offsets = [0, 0], sizes = [16, 64], strides = [1, 1]} : vector<16x256xf32> to vector<16x64xf32>
    %cst_32 = arith.constant 5.000000e-01 : f32
    %108 = vector.broadcast %cst_32 : f32 to vector<16x64xf32>
    %109 = arith.mulf %108, %107 : vector<16x64xf32>
    %cst_33 = arith.constant 5.000000e-01 : f32
    %110 = vector.broadcast %cst_33 : f32 to vector<16x64xf32>
    %111 = arith.addf %109, %110 : vector<16x64xf32>
    %112 = vector.extract_strided_slice %106 {offsets = [0, 64], sizes = [16, 64], strides = [1, 1]} : vector<16x256xf32> to vector<16x64xf32>
    %cst_34 = arith.constant 5.000000e-01 : f32
    %113 = vector.broadcast %cst_34 : f32 to vector<16x64xf32>
    %114 = arith.mulf %113, %112 : vector<16x64xf32>
    %cst_35 = arith.constant 5.000000e-01 : f32
    %115 = vector.broadcast %cst_35 : f32 to vector<16x64xf32>
    %116 = arith.addf %114, %115 : vector<16x64xf32>
    %117 = vector.extract_strided_slice %106 {offsets = [0, 128], sizes = [16, 64], strides = [1, 1]} : vector<16x256xf32> to vector<16x64xf32>
    %118 = vector.extract_strided_slice %106 {offsets = [0, 192], sizes = [16, 64], strides = [1, 1]} : vector<16x256xf32> to vector<16x64xf32>
    %cst_36 = arith.constant 5.000000e-01 : f32
    %119 = vector.broadcast %cst_36 : f32 to vector<16x64xf32>
    %120 = arith.mulf %119, %118 : vector<16x64xf32>
    %cst_37 = arith.constant 5.000000e-01 : f32
    %121 = vector.broadcast %cst_37 : f32 to vector<16x64xf32>
    %122 = arith.addf %120, %121 : vector<16x64xf32>
    %123 = arith.mulf %116, %93 : vector<16x64xf32>
    %124 = arith.mulf %111, %117 : vector<16x64xf32>
    %125 = arith.addf %123, %124 : vector<16x64xf32>
    %126 = math.tanh %125 : vector<16x64xf32>
    %127 = arith.mulf %122, %126 : vector<16x64xf32>
    %c4_i32 = arith.constant 4 : i32
    %128 = arith.index_cast %c4_i32 : i32 to index
    %c0_38 = arith.constant 0 : index
    %c0_39 = arith.constant 0 : index
    %129 = vector.load %arg1[%128, %c0_38, %c0_39] : memref<8x16x256xbf16, #tpu.memory_space<vmem>>, vector<1x16x256xbf16>
    %130 = vector.shape_cast %129 : vector<1x16x256xbf16> to vector<16x256xbf16>
    %131 = arith.extf %130 : vector<16x256xbf16> to vector<16x256xf32>
    %132 = vector.broadcast %1 : vector<1x256xf32> to vector<16x256xf32>
    %133 = arith.addf %131, %132 : vector<16x256xf32>
    %134 = arith.truncf %127 : vector<16x64xf32> to vector<16x64xbf16>
    %cst_40 = arith.constant dense<0.000000e+00> : vector<16x256xf32>
    %135 = tpu.matmul %134, %0, %cst_40 {dimension_numbers = #tpu.dot_dimension_numbers<[1], [0], [0], [1], [0, 0, 1, 1], [], []>} : vector<16x64xbf16>, vector<64x256xbf16>, vector<16x256xf32> -> vector<16x256xf32>
    %136 = arith.addf %133, %135 : vector<16x256xf32>
    %137 = arith.mulf %136, %10 : vector<16x256xf32>
    %138 = math.tanh %137 : vector<16x256xf32>
    %139 = vector.extract_strided_slice %138 {offsets = [0, 0], sizes = [16, 64], strides = [1, 1]} : vector<16x256xf32> to vector<16x64xf32>
    %cst_41 = arith.constant 5.000000e-01 : f32
    %140 = vector.broadcast %cst_41 : f32 to vector<16x64xf32>
    %141 = arith.mulf %140, %139 : vector<16x64xf32>
    %cst_42 = arith.constant 5.000000e-01 : f32
    %142 = vector.broadcast %cst_42 : f32 to vector<16x64xf32>
    %143 = arith.addf %141, %142 : vector<16x64xf32>
    %144 = vector.extract_strided_slice %138 {offsets = [0, 64], sizes = [16, 64], strides = [1, 1]} : vector<16x256xf32> to vector<16x64xf32>
    %cst_43 = arith.constant 5.000000e-01 : f32
    %145 = vector.broadcast %cst_43 : f32 to vector<16x64xf32>
    %146 = arith.mulf %145, %144 : vector<16x64xf32>
    %cst_44 = arith.constant 5.000000e-01 : f32
    %147 = vector.broadcast %cst_44 : f32 to vector<16x64xf32>
    %148 = arith.addf %146, %147 : vector<16x64xf32>
    %149 = vector.extract_strided_slice %138 {offsets = [0, 128], sizes = [16, 64], strides = [1, 1]} : vector<16x256xf32> to vector<16x64xf32>
    %150 = vector.extract_strided_slice %138 {offsets = [0, 192], sizes = [16, 64], strides = [1, 1]} : vector<16x256xf32> to vector<16x64xf32>
    %cst_45 = arith.constant 5.000000e-01 : f32
    %151 = vector.broadcast %cst_45 : f32 to vector<16x64xf32>
    %152 = arith.mulf %151, %150 : vector<16x64xf32>
    %cst_46 = arith.constant 5.000000e-01 : f32
    %153 = vector.broadcast %cst_46 : f32 to vector<16x64xf32>
    %154 = arith.addf %152, %153 : vector<16x64xf32>
    %155 = arith.mulf %148, %125 : vector<16x64xf32>
    %156 = arith.mulf %143, %149 : vector<16x64xf32>
    %157 = arith.addf %155, %156 : vector<16x64xf32>
    %158 = math.tanh %157 : vector<16x64xf32>
    %159 = arith.mulf %154, %158 : vector<16x64xf32>
    %c5_i32 = arith.constant 5 : i32
    %160 = arith.index_cast %c5_i32 : i32 to index
    %c0_47 = arith.constant 0 : index
    %c0_48 = arith.constant 0 : index
    %161 = vector.load %arg1[%160, %c0_47, %c0_48] : memref<8x16x256xbf16, #tpu.memory_space<vmem>>, vector<1x16x256xbf16>
    %162 = vector.shape_cast %161 : vector<1x16x256xbf16> to vector<16x256xbf16>
    %163 = arith.extf %162 : vector<16x256xbf16> to vector<16x256xf32>
    %164 = vector.broadcast %1 : vector<1x256xf32> to vector<16x256xf32>
    %165 = arith.addf %163, %164 : vector<16x256xf32>
    %166 = arith.truncf %159 : vector<16x64xf32> to vector<16x64xbf16>
    %cst_49 = arith.constant dense<0.000000e+00> : vector<16x256xf32>
    %167 = tpu.matmul %166, %0, %cst_49 {dimension_numbers = #tpu.dot_dimension_numbers<[1], [0], [0], [1], [0, 0, 1, 1], [], []>} : vector<16x64xbf16>, vector<64x256xbf16>, vector<16x256xf32> -> vector<16x256xf32>
    %168 = arith.addf %165, %167 : vector<16x256xf32>
    %169 = arith.mulf %168, %10 : vector<16x256xf32>
    %170 = math.tanh %169 : vector<16x256xf32>
    %171 = vector.extract_strided_slice %170 {offsets = [0, 0], sizes = [16, 64], strides = [1, 1]} : vector<16x256xf32> to vector<16x64xf32>
    %cst_50 = arith.constant 5.000000e-01 : f32
    %172 = vector.broadcast %cst_50 : f32 to vector<16x64xf32>
    %173 = arith.mulf %172, %171 : vector<16x64xf32>
    %cst_51 = arith.constant 5.000000e-01 : f32
    %174 = vector.broadcast %cst_51 : f32 to vector<16x64xf32>
    %175 = arith.addf %173, %174 : vector<16x64xf32>
    %176 = vector.extract_strided_slice %170 {offsets = [0, 64], sizes = [16, 64], strides = [1, 1]} : vector<16x256xf32> to vector<16x64xf32>
    %cst_52 = arith.constant 5.000000e-01 : f32
    %177 = vector.broadcast %cst_52 : f32 to vector<16x64xf32>
    %178 = arith.mulf %177, %176 : vector<16x64xf32>
    %cst_53 = arith.constant 5.000000e-01 : f32
    %179 = vector.broadcast %cst_53 : f32 to vector<16x64xf32>
    %180 = arith.addf %178, %179 : vector<16x64xf32>
    %181 = vector.extract_strided_slice %170 {offsets = [0, 128], sizes = [16, 64], strides = [1, 1]} : vector<16x256xf32> to vector<16x64xf32>
    %182 = vector.extract_strided_slice %170 {offsets = [0, 192], sizes = [16, 64], strides = [1, 1]} : vector<16x256xf32> to vector<16x64xf32>
    %cst_54 = arith.constant 5.000000e-01 : f32
    %183 = vector.broadcast %cst_54 : f32 to vector<16x64xf32>
    %184 = arith.mulf %183, %182 : vector<16x64xf32>
    %cst_55 = arith.constant 5.000000e-01 : f32
    %185 = vector.broadcast %cst_55 : f32 to vector<16x64xf32>
    %186 = arith.addf %184, %185 : vector<16x64xf32>
    %187 = arith.mulf %180, %157 : vector<16x64xf32>
    %188 = arith.mulf %175, %181 : vector<16x64xf32>
    %189 = arith.addf %187, %188 : vector<16x64xf32>
    %190 = math.tanh %189 : vector<16x64xf32>
    %191 = arith.mulf %186, %190 : vector<16x64xf32>
    %c6_i32 = arith.constant 6 : i32
    %192 = arith.index_cast %c6_i32 : i32 to index
    %c0_56 = arith.constant 0 : index
    %c0_57 = arith.constant 0 : index
    %193 = vector.load %arg1[%192, %c0_56, %c0_57] : memref<8x16x256xbf16, #tpu.memory_space<vmem>>, vector<1x16x256xbf16>
    %194 = vector.shape_cast %193 : vector<1x16x256xbf16> to vector<16x256xbf16>
    %195 = arith.extf %194 : vector<16x256xbf16> to vector<16x256xf32>
    %196 = vector.broadcast %1 : vector<1x256xf32> to vector<16x256xf32>
    %197 = arith.addf %195, %196 : vector<16x256xf32>
    %198 = arith.truncf %191 : vector<16x64xf32> to vector<16x64xbf16>
    %cst_58 = arith.constant dense<0.000000e+00> : vector<16x256xf32>
    %199 = tpu.matmul %198, %0, %cst_58 {dimension_numbers = #tpu.dot_dimension_numbers<[1], [0], [0], [1], [0, 0, 1, 1], [], []>} : vector<16x64xbf16>, vector<64x256xbf16>, vector<16x256xf32> -> vector<16x256xf32>
    %200 = arith.addf %197, %199 : vector<16x256xf32>
    %201 = arith.mulf %200, %10 : vector<16x256xf32>
    %202 = math.tanh %201 : vector<16x256xf32>
    %203 = vector.extract_strided_slice %202 {offsets = [0, 0], sizes = [16, 64], strides = [1, 1]} : vector<16x256xf32> to vector<16x64xf32>
    %cst_59 = arith.constant 5.000000e-01 : f32
    %204 = vector.broadcast %cst_59 : f32 to vector<16x64xf32>
    %205 = arith.mulf %204, %203 : vector<16x64xf32>
    %cst_60 = arith.constant 5.000000e-01 : f32
    %206 = vector.broadcast %cst_60 : f32 to vector<16x64xf32>
    %207 = arith.addf %205, %206 : vector<16x64xf32>
    %208 = vector.extract_strided_slice %202 {offsets = [0, 64], sizes = [16, 64], strides = [1, 1]} : vector<16x256xf32> to vector<16x64xf32>
    %cst_61 = arith.constant 5.000000e-01 : f32
    %209 = vector.broadcast %cst_61 : f32 to vector<16x64xf32>
    %210 = arith.mulf %209, %208 : vector<16x64xf32>
    %cst_62 = arith.constant 5.000000e-01 : f32
    %211 = vector.broadcast %cst_62 : f32 to vector<16x64xf32>
    %212 = arith.addf %210, %211 : vector<16x64xf32>
    %213 = vector.extract_strided_slice %202 {offsets = [0, 128], sizes = [16, 64], strides = [1, 1]} : vector<16x256xf32> to vector<16x64xf32>
    %214 = vector.extract_strided_slice %202 {offsets = [0, 192], sizes = [16, 64], strides = [1, 1]} : vector<16x256xf32> to vector<16x64xf32>
    %cst_63 = arith.constant 5.000000e-01 : f32
    %215 = vector.broadcast %cst_63 : f32 to vector<16x64xf32>
    %216 = arith.mulf %215, %214 : vector<16x64xf32>
    %cst_64 = arith.constant 5.000000e-01 : f32
    %217 = vector.broadcast %cst_64 : f32 to vector<16x64xf32>
    %218 = arith.addf %216, %217 : vector<16x64xf32>
    %219 = arith.mulf %212, %189 : vector<16x64xf32>
    %220 = arith.mulf %207, %213 : vector<16x64xf32>
    %221 = arith.addf %219, %220 : vector<16x64xf32>
    %222 = math.tanh %221 : vector<16x64xf32>
    %223 = arith.mulf %218, %222 : vector<16x64xf32>
    %c7_i32 = arith.constant 7 : i32
    %224 = arith.index_cast %c7_i32 : i32 to index
    %c0_65 = arith.constant 0 : index
    %c0_66 = arith.constant 0 : index
    %225 = vector.load %arg1[%224, %c0_65, %c0_66] : memref<8x16x256xbf16, #tpu.memory_space<vmem>>, vector<1x16x256xbf16>
    %226 = vector.shape_cast %225 : vector<1x16x256xbf16> to vector<16x256xbf16>
    %227 = arith.extf %226 : vector<16x256xbf16> to vector<16x256xf32>
    %228 = vector.broadcast %1 : vector<1x256xf32> to vector<16x256xf32>
    %229 = arith.addf %227, %228 : vector<16x256xf32>
    %230 = arith.truncf %223 : vector<16x64xf32> to vector<16x64xbf16>
    %cst_67 = arith.constant dense<0.000000e+00> : vector<16x256xf32>
    %231 = tpu.matmul %230, %0, %cst_67 {dimension_numbers = #tpu.dot_dimension_numbers<[1], [0], [0], [1], [0, 0, 1, 1], [], []>} : vector<16x64xbf16>, vector<64x256xbf16>, vector<16x256xf32> -> vector<16x256xf32>
    %232 = arith.addf %229, %231 : vector<16x256xf32>
    %233 = arith.mulf %232, %10 : vector<16x256xf32>
    %234 = math.tanh %233 : vector<16x256xf32>
    %235 = vector.extract_strided_slice %234 {offsets = [0, 0], sizes = [16, 64], strides = [1, 1]} : vector<16x256xf32> to vector<16x64xf32>
    %cst_68 = arith.constant 5.000000e-01 : f32
    %236 = vector.broadcast %cst_68 : f32 to vector<16x64xf32>
    %237 = arith.mulf %236, %235 : vector<16x64xf32>
    %cst_69 = arith.constant 5.000000e-01 : f32
    %238 = vector.broadcast %cst_69 : f32 to vector<16x64xf32>
    %239 = arith.addf %237, %238 : vector<16x64xf32>
    %240 = vector.extract_strided_slice %234 {offsets = [0, 64], sizes = [16, 64], strides = [1, 1]} : vector<16x256xf32> to vector<16x64xf32>
    %cst_70 = arith.constant 5.000000e-01 : f32
    %241 = vector.broadcast %cst_70 : f32 to vector<16x64xf32>
    %242 = arith.mulf %241, %240 : vector<16x64xf32>
    %cst_71 = arith.constant 5.000000e-01 : f32
    %243 = vector.broadcast %cst_71 : f32 to vector<16x64xf32>
    %244 = arith.addf %242, %243 : vector<16x64xf32>
    %245 = vector.extract_strided_slice %234 {offsets = [0, 128], sizes = [16, 64], strides = [1, 1]} : vector<16x256xf32> to vector<16x64xf32>
    %246 = vector.extract_strided_slice %234 {offsets = [0, 192], sizes = [16, 64], strides = [1, 1]} : vector<16x256xf32> to vector<16x64xf32>
    %cst_72 = arith.constant 5.000000e-01 : f32
    %247 = vector.broadcast %cst_72 : f32 to vector<16x64xf32>
    %248 = arith.mulf %247, %246 : vector<16x64xf32>
    %cst_73 = arith.constant 5.000000e-01 : f32
    %249 = vector.broadcast %cst_73 : f32 to vector<16x64xf32>
    %250 = arith.addf %248, %249 : vector<16x64xf32>
    %251 = arith.mulf %244, %221 : vector<16x64xf32>
    %252 = arith.mulf %239, %245 : vector<16x64xf32>
    %253 = arith.addf %251, %252 : vector<16x64xf32>
    %254 = math.tanh %253 : vector<16x64xf32>
    %255 = arith.mulf %250, %254 : vector<16x64xf32>
    %c7_i32_74 = arith.constant 7 : i32
    %256 = arith.truncf %255 : vector<16x64xf32> to vector<16x64xbf16>
    %c0_75 = arith.constant 0 : index
    %c0_76 = arith.constant 0 : index
    %257 = vector.load %arg4[%c0_75, %c0_76] : memref<64x128xbf16, #tpu.memory_space<vmem>>, vector<64x128xbf16>
    %cst_77 = arith.constant dense<0.000000e+00> : vector<16x128xf32>
    %258 = tpu.matmul %256, %257, %cst_77 {dimension_numbers = #tpu.dot_dimension_numbers<[1], [0], [0], [1], [0, 0, 1, 1], [], []>} : vector<16x64xbf16>, vector<64x128xbf16>, vector<16x128xf32> -> vector<16x128xf32>
    %c0_78 = arith.constant 0 : index
    %c0_79 = arith.constant 0 : index
    %259 = vector.load %arg5[%c0_78, %c0_79] : memref<1x128xf32, #tpu.memory_space<vmem>>, vector<1x128xf32>
    %260 = vector.broadcast %259 : vector<1x128xf32> to vector<16x128xf32>
    %261 = arith.addf %258, %260 : vector<16x128xf32>
    %c0_80 = arith.constant 0 : index
    %c0_81 = arith.constant 0 : index
    %262 = vector.load %arg6[%c0_80, %c0_81] : memref<16x128xf32, #tpu.memory_space<vmem>>, vector<16x128xf32>
    tpu.vector_store %arg6[%c0_80, %c0_81], %261 {strides = array<i32>} : memref<16x128xf32, #tpu.memory_space<vmem>>, vector<16x128xf32>,
    return
  }
  func.func @transform_0(%arg0: i32) -> (i32, i32, i32) {
    %c0_i32 = arith.constant 0 : i32
    %c0_i32_0 = arith.constant 0 : i32
    %c0_i32_1 = arith.constant 0 : i32
    return %c0_i32, %arg0, %c0_i32_0 : i32, i32, i32
  }
  func.func @transform_1(%arg0: i32) -> (i32, i32) {
    %c0_i32 = arith.constant 0 : i32
    %c0_i32_0 = arith.constant 0 : i32
    %c0_i32_1 = arith.constant 0 : i32
    return %c0_i32, %c0_i32_0 : i32, i32
  }
  func.func @transform_2(%arg0: i32) -> (i32, i32) {
    %c0_i32 = arith.constant 0 : i32
    %c0_i32_0 = arith.constant 0 : i32
    %c0_i32_1 = arith.constant 0 : i32
    return %c0_i32, %c0_i32_0 : i32, i32
  }
  func.func @transform_3(%arg0: i32) -> (i32, i32) {
    %c0_i32 = arith.constant 0 : i32
    %c0_i32_0 = arith.constant 0 : i32
    %c0_i32_1 = arith.constant 0 : i32
    return %c0_i32, %c0_i32_0 : i32, i32
  }
  func.func @transform_4(%arg0: i32) -> (i32, i32) {
    %c0_i32 = arith.constant 0 : i32
    %c0_i32_0 = arith.constant 0 : i32
    %c0_i32_1 = arith.constant 0 : i32
    return %c0_i32, %c0_i32_0 : i32, i32
  }
  func.func @transform_5(%arg0: i32) -> (i32, i32) {
    %c0_i32 = arith.constant 0 : i32
    %c0_i32_0 = arith.constant 0 : i32
    return %arg0, %c0_i32 : i32, i32
  }
}

</mosaic_0001>

<bundles_post_ra>
// kernel: rnn_forward.1
= control target key start
LH: loop header
LB: loop body
LE: loop exit
PB: predicated region body
PF: predicated region fallthrough
CT: control target
= control target key end

     0   :  { %v30_v0 = vlaneseq  ;;  %v1096_v15 = vmov 0.5   ;;  %v1097_v36 = vmov 0   ;;  %s1098_s6 = smov 64   ;;  %vm147_vm1 = vcmask 523264   ;;  %s1434_s0 = inlined_call_operand.vmem [shape: bf16[8,16,256], index: 0, kind: input, shape index: {}]   ;;  %s1435_s1 = inlined_call_operand.vmem [shape: f32[1,256], index: 1, kind: input, shape index: {}]   ;;  %s1436_s2 = inlined_call_operand.vmem [shape: bf16[64,256], index: 2, kind: input, shape index: {}]   ;;  %s1437_s3 = inlined_call_operand.vmem [shape: bf16[64,128], index: 3, kind: input, shape index: {}]   ;;  %s1438_s4 = inlined_call_operand.vmem [shape: f32[1,128], index: 4, kind: input, shape index: {}]   ;;  %s1439_s5 = inlined_call_operand.vmem [shape: f32[16,128], index: 5, kind: output, shape index: {}]  }
   0x1   :  { %v41_v1 = vld [vmem:[%s1434_s0] sm:$0xff]  ;;  %v42_v2 = vld [vmem:[%s1434_s0 + $0x8] sm:$0xff]  ;;  %v1155_v35 = vld [vmem:[%s1436_s2 + $0x34] ss:$8 sps:$4 sm:$0xff]   ;;  %183 = vmatprep.mubr.bf16.mxu0 %v1097_v36  ;;  %290 = vmatprep.mubr.bf16.mxu1 %v1097_v36  ;;  %vm1100_vm2 = vmmov 0  }
   0x2   :  { %v31_v3 = vand.u32 127, %v30_v0  ;;  %v49_v4 = vshrl.u32 %v30_v0, 7  ;;  %v29_v5 = vld [vmem:[%s1435_s1] sm:$0x3]  ;;  %v43_v6 = vunpack.c.l.bf16 %v41_v1  ;;  %v44_v7 = vunpack.c.h.bf16 %v41_v1  ;;  %v1162_v37 = vld [vmem:[%s1436_s2 + $0x30] ss:$8 sps:$4 sm:$0xff]   ;;  %159 = vmatprep.subr.bf16.mxu0 %v1155_v35  ;;  %266 = vmatprep.subr.bf16.mxu1 %v1155_v35 }
   0x3   :  { %v45_v8 = vunpack.c.l.bf16 %v42_v2  ;;  %v46_v12 = vunpack.c.h.bf16 %v42_v2  ;;  %v1168_v38 = vld [vmem:[%s1436_s2 + $0x24] ss:$8 sps:$4 sm:$0xff]   ;;  %160 = vmatpush1.bf16.msra.mxu0 %v1162_v37  ;;  %v1175_v40 = vld [vmem:[%s1436_s2 + $0x20] ss:$8 sps:$4 sm:$0xff]   ;;  %267 = vmatpush1.bf16.msra.mxu1 %v1162_v37  ;;  %v1183_v41 = vld [vmem:[%s1436_s2 + $0x14] ss:$8 sps:$4 sm:$0xff]  }
   0x4   :  { %v32_v9 = vadd.s32 128, %v31_v3  ;;  %v50_v10 = vsub.s32 0, %v49_v4  ;;  %v54_v11 = vsub.s32 1, %v49_v4  ;;  %161 = vmatprep.subr.bf16.mxu0 %v1168_v38  ;;  %268 = vmatprep.subr.bf16.mxu1 %v1168_v38  ;;  %v1190_v43 = vld [vmem:[%s1436_s2 + $0x10] ss:$8 sps:$4 sm:$0xff]  }
   0x5   :  { %v1198_v44 = vld [vmem:[%s1436_s2 + $0x4] ss:$8 sps:$4 sm:$0xff]   ;;  %v1205_v45 = vld [vmem:[%s1436_s2] ss:$8 sps:$4 sm:$0xff]   ;;  %v927_v56 = vld [vmem:[%s1434_s0 + $0x10] sm:$0xff] }
   0x6   :  { %vm36_vm0 = vcmp.lt.s32.totalorder %v32_v9, 192  ;;  %v1140_v13 = vrot.slane %v29_v5, %v50_v10  ;;  %v1142_v14 = vrot.slane %v29_v5, %v54_v11  ;;  %v95_v57 = vunpack.c.l.bf16 %v927_v56  ;;  %v928_v58 = vld [vmem:[%s1434_s0 + $0x18] sm:$0xff] }
   0x7   :  { %v1144_v16 = vsel %vm36_vm0, 1.0, %v1096_v15  ;;  %162 = vmatpush1.bf16.msra.mxu0 %v1175_v40  ;;  %269 = vmatpush1.bf16.msra.mxu1 %v1175_v40  ;;  %v96_v59 = vunpack.c.h.bf16 %v927_v56  ;;  %v97_v61 = vunpack.c.l.bf16 %v928_v58  ;;  %v98_v63 = vunpack.c.h.bf16 %v928_v58  ;;  %v939_v56 = vld [vmem:[%s1434_s0 + $0x28] sm:$0xff] }
   0x8   :  { %v58_v17 = vadd.f32 %v1140_v13, %v43_v6  ;;  %v59_v18 = vadd.f32 %v1142_v14, %v44_v7  ;;  %v60_v19 = vadd.f32 %v1140_v13, %v45_v8  ;;  %v61_v20 = vadd.f32 %v1142_v14, %v46_v12  ;;  %163 = vmatprep.subr.bf16.mxu0 %v1183_v41 }
   0x9   :  { %270 = vmatprep.subr.bf16.mxu1 %v1183_v41  ;;  %v99_v60 = vadd.f32 %v95_v57, %v1140_v13  ;;  %v100_v62 = vadd.f32 %v96_v59, %v1142_v14  ;;  %v101_v2 = vadd.f32 %v97_v61, %v1140_v13  ;;  %v102_v6 = vadd.f32 %v98_v63, %v1142_v14 }
   0xa   :  { %v62_v21 = vmul.f32 0.5, %v58_v17  ;;  %v63_v22 = vmul.f32 %v59_v18, %v1144_v16  ;;  %v64_v23 = vmul.f32 0.5, %v60_v19  ;;  %v65_v24 = vmul.f32 %v61_v20, %v1144_v16 }
   0xb   :  { %164 = vmatpush1.bf16.msra.mxu0 %v1190_v43  ;;  %271 = vmatpush1.bf16.msra.mxu1 %v1190_v43  ;;  %v245_v59 = vunpack.c.l.bf16 %v939_v56  ;;  %v246_v61 = vunpack.c.h.bf16 %v939_v56 }
   0xc   :  { %1000 = vtanh.f32 %v62_v21  ;;  %165 = vmatprep.subr.bf16.mxu0 %v1198_v44  ;;  %272 = vmatprep.subr.bf16.mxu1 %v1198_v44 }
   0xd   :  { %1002 = vtanh.f32 %v63_v22 }
   0xe   :  { %1004 = vtanh.f32 %v64_v23 }
   0xf   :  { %1006 = vtanh.f32 %v65_v24  ;;  %166 = vmatpush1.bf16.msra.mxu0 %v1205_v45  ;;  %273 = vmatpush1.bf16.msra.mxu1 %v1205_v45 }
  0x10   :  { %365 = vmatprep.subr.bf16.mxu0 %v1155_v35  ;;  %464 = vmatprep.subr.bf16.mxu1 %v1155_v35 }
  0x19   :  { %v1001_v25 = vpop.eup %1000 }
  0x1a   :  { %v1003_v26 = vpop.eup %1002  ;;  %v70_v27 = vmul.f32 0.5, %v1001_v25 }
  0x1b   :  { %v1005_v28 = vpop.eup %1004  ;;  %v74_v46 = vmul.f32 0.5, %v1003_v26 }
  0x1c   :  { %v72_v29 = vadd.f32 0.5, %v70_v27  ;;  %v71_v30 = vmul.f32 0.5, %v1005_v28  ;;  %v1007_v31 = vpop.eup %1006 }
  0x1d   :  { %v75_v47 = vmul.f32 0.5, %v1007_v31  ;;  %v76_v49 = vadd.f32 0.5, %v74_v46 }
  0x1e   :  { %v78_v32 = vmul.f32 %v1003_v26, %v72_v29  ;;  %v73_v33 = vadd.f32 0.5, %v71_v30 }
  0x1f   :  { %v77_v50 = vadd.f32 0.5, %v75_v47 }
  0x20   :  { %1008 = vtanh.f32 %v78_v32  ;;  %v79_v34 = vmul.f32 %v1007_v31, %v73_v33 }
  0x22   :  { %1010 = vtanh.f32 %v79_v34 }
  0x2d   :  { %v1009_v39 = vpop.eup %1008 }
  0x2e   :  { %84 = vrot.lane.b32.xlu0 %v1009_v39, %s1098_s6 }
  0x2f   :  { %v1011_v42 = vpop.eup %1010 }
  0x32   :  { %86 = vrot.lane.b32.xlu0 %v1011_v42, %s1098_s6 }
  0x36   :  { %218 = vrot.lane.b32.xlu0 %v79_v34, %s1098_s6 }
  0xa0   :  { %v85_v48 = vpop.permute.xlu0 %84 }
  0xa1   :  { %v90_v52 = vmul.f32 %v85_v48, %v76_v49 }
  0xa4   :  { %v87_v51 = vpop.permute.xlu0 %86 }
  0xa5   :  { %v91_v53 = vmul.f32 %v87_v51, %v77_v50 }
  0xa7   :  { %v103_v54 = vpack.c.bf16 %v91_v53, %v90_v52 }
  0xa8   :  { %v219_v29 = vpop.permute.xlu0 %218 }
  0xa9   :  { %105 = vrot.lane.b32.xlu1 %v103_v54, %s1098_s6  ;;  %v938_v54 = vld [vmem:[%s1434_s0 + $0x20] sm:$0xff] }
  0xaa   :  { %v244_v57 = vunpack.c.h.bf16 %v938_v54 }
  0xad   :  { %216 = vrot.lane.b32.xlu1 %v78_v32, %s1098_s6 }
 0x11b   :  { %v106_v55 = vpop.permute.xlu1 %105 }
 0x11c   :  { %937 = vmatmul.mubr.msk.bf16.vlgmr.msra.gmra.mxu0 %vm147_vm1, %v106_v55  ;;  %v243_v55 = vunpack.c.l.bf16 %v938_v54 }
 0x11d   :  { %366 = vmatpush1.bf16.msra.mxu0 %v1162_v37  ;;  %389 = vmatprep.mubr.bf16.mxu0 %v1097_v36 }
 0x11e   :  { %367 = vmatprep.subr.bf16.mxu0 %v1168_v38  ;;  %v247_v58 = vadd.f32 %v243_v55, %v1140_v13 }
 0x11f   :  { %v217_v27 = vpop.permute.xlu1 %216 }
 0x121   :  { %368 = vmatpush1.bf16.msra.mxu0 %v1175_v40 }
 0x122   :  { %369 = vmatprep.subr.bf16.mxu0 %v1183_v41 }
 0x125   :  { %370 = vmatpush1.bf16.msra.mxu0 %v1190_v43 }
 0x126   :  { %371 = vmatprep.subr.bf16.mxu0 %v1198_v44 }
 0x129   :  { %372 = vmatpush1.bf16.msra.mxu0 %v1205_v45 }
 0x12a   :  { %563 = vmatprep.subr.bf16.mxu0 %v1155_v35 }
 0x1dc   :  { %v185_v0 = vpop.f32.mrf.mxu0 }
 0x1dd   :  { %v194_v1 = vadd.f32 %v185_v0, %v99_v60  ;;  %v248_v60 = vadd.f32 %v244_v57, %v1142_v14  ;;  %v249_v0 = vadd.f32 %v245_v59, %v1140_v13 }
 0x1de   :  { %v187_v3 = vpop.f32.mrf.mxu0 }
 0x1df   :  { %v198_v4 = vmul.f32 0.5, %v194_v1  ;;  %v195_v5 = vadd.f32 %v187_v3, %v100_v62 }
 0x1e0   :  { %v189_v7 = vpop.f32.mrf.mxu0 }
 0x1e1   :  { %1012 = vtanh.f32 %v198_v4  ;;  %v199_v8 = vmul.f32 %v195_v5, %v1144_v16  ;;  %v196_v9 = vadd.f32 %v189_v7, %v101_v2  ;;  %v250_v4 = vadd.f32 %v246_v61, %v1142_v14 }
 0x1e2   :  { %v191_v10 = vpop.f32.mrf.mxu0 }
 0x1e3   :  { %v200_v11 = vmul.f32 0.5, %v196_v9  ;;  %v197_v12 = vadd.f32 %v191_v10, %v102_v6  ;;  %1014 = vtanh.f32 %v199_v8 }
 0x1e5   :  { %1016 = vtanh.f32 %v200_v11  ;;  %v201_v15 = vmul.f32 %v197_v12, %v1144_v16 }
 0x1e7   :  { %1018 = vtanh.f32 %v201_v15 }
 0x1ee   :  { %v1013_v17 = vpop.eup %1012 }
 0x1ef   :  { %v206_v18 = vmul.f32 0.5, %v1013_v17 }
 0x1f0   :  { %v1015_v19 = vpop.eup %1014 }
 0x1f1   :  { %v208_v20 = vadd.f32 0.5, %v206_v18  ;;  %v210_v39 = vmul.f32 0.5, %v1015_v19 }
 0x1f2   :  { %v1017_v21 = vpop.eup %1016 }
 0x1f3   :  { %v224_v22 = vmul.f32 %v1015_v19, %v208_v20  ;;  %v207_v23 = vmul.f32 0.5, %v1017_v21  ;;  %v222_v28 = vmul.f32 %v217_v27, %v208_v20  ;;  %v212_v47 = vadd.f32 0.5, %v210_v39 }
 0x1f4   :  { %v1019_v25 = vpop.eup %1018 }
 0x1f5   :  { %228 = vrot.lane.b32.xlu1 %v224_v22, %s1098_s6  ;;  %v209_v24 = vadd.f32 0.5, %v207_v23  ;;  %v211_v42 = vmul.f32 0.5, %v1019_v25 }
 0x1f7   :  { %v225_v26 = vmul.f32 %v1019_v25, %v209_v24  ;;  %v223_v32 = vmul.f32 %v219_v29, %v209_v24  ;;  %v213_v48 = vadd.f32 0.5, %v211_v42 }
 0x1f9   :  { %230 = vrot.lane.b32.xlu0 %v225_v26, %s1098_s6 }
 0x267   :  { %v229_v30 = vpop.permute.xlu1 %228 }
 0x268   :  { %v1241_v31 = vadd.f32 %v229_v30, %v222_v28 }
 0x26a   :  { %1020 = vtanh.f32 %v1241_v31 }
 0x26b   :  { %v231_v33 = vpop.permute.xlu0 %230 }
 0x26c   :  { %v1244_v34 = vadd.f32 %v231_v33, %v223_v32 }
 0x26e   :  { %1022 = vtanh.f32 %v1244_v34 }
 0x277   :  { %v1021_v46 = vpop.eup %1020 }
 0x278   :  { %v238_v50 = vmul.f32 %v1021_v46, %v212_v47 }
 0x27b   :  { %v1023_v49 = vpop.eup %1022 }
 0x27c   :  { %v239_v51 = vmul.f32 %v1023_v49, %v213_v48 }
 0x27e   :  { %v251_v52 = vpack.c.bf16 %v239_v51, %v238_v50 }
 0x280   :  { %253 = vrot.lane.b32.xlu1 %v251_v52, %s1098_s6  ;;  %v942_v52 = vld [vmem:[%s1434_s0 + $0x38] sm:$0xff] }
 0x281   :  { %v344_v55 = vunpack.c.l.bf16 %v942_v52  ;;  %v345_v57 = vunpack.c.h.bf16 %v942_v52 }
 0x2f2   :  { %v254_v53 = vpop.permute.xlu1 %253 }
 0x2f3   :  { %940 = vmatmul.mubr.msk.bf16.vlgmr.msra.gmra.mxu1 %vm147_vm1, %v254_v53 }
 0x2f4   :  { %465 = vmatpush1.bf16.msra.mxu1 %v1162_v37  ;;  %488 = vmatprep.mubr.bf16.mxu1 %v1097_v36 }
 0x2f5   :  { %466 = vmatprep.subr.bf16.mxu1 %v1168_v38 }
 0x2f8   :  { %467 = vmatpush1.bf16.msra.mxu1 %v1175_v40 }
 0x2f9   :  { %468 = vmatprep.subr.bf16.mxu1 %v1183_v41 }
 0x2fc   :  { %469 = vmatpush1.bf16.msra.mxu1 %v1190_v43 }
 0x2fd   :  { %470 = vmatprep.subr.bf16.mxu1 %v1198_v44 }
 0x300   :  { %471 = vmatpush1.bf16.msra.mxu1 %v1205_v45 }
 0x301   :  { %662 = vmatprep.subr.bf16.mxu1 %v1155_v35 }
 0x3b3   :  { %v292_v62 = vpop.f32.mrf.mxu1 }
 0x3b4   :  { %v301_v63 = vadd.f32 %v292_v62, %v247_v58 }
 0x3b5   :  { %v294_v1 = vpop.f32.mrf.mxu1 }
 0x3b6   :  { %v305_v2 = vmul.f32 0.5, %v301_v63  ;;  %v302_v3 = vadd.f32 %v294_v1, %v248_v60  ;;  %v349_v63 = vadd.f32 %v345_v57, %v1142_v14 }
 0x3b7   :  { %v296_v5 = vpop.f32.mrf.mxu1 }
 0x3b8   :  { %1024 = vtanh.f32 %v305_v2  ;;  %v306_v6 = vmul.f32 %v302_v3, %v1144_v16  ;;  %v303_v7 = vadd.f32 %v296_v5, %v249_v0 }
 0x3b9   :  { %v298_v8 = vpop.f32.mrf.mxu1 }
 0x3ba   :  { %v307_v9 = vmul.f32 0.5, %v303_v7  ;;  %v304_v10 = vadd.f32 %v298_v8, %v250_v4  ;;  %1026 = vtanh.f32 %v306_v6 }
 0x3bc   :  { %1028 = vtanh.f32 %v307_v9  ;;  %v308_v11 = vmul.f32 %v304_v10, %v1144_v16 }
 0x3be   :  { %1030 = vtanh.f32 %v308_v11 }
 0x3c5   :  { %v1025_v12 = vpop.eup %1024 }
 0x3c6   :  { %v313_v15 = vmul.f32 0.5, %v1025_v12 }
 0x3c7   :  { %v1027_v17 = vpop.eup %1026 }
 0x3c8   :  { %v315_v18 = vadd.f32 0.5, %v313_v15  ;;  %v317_v32 = vmul.f32 0.5, %v1027_v17 }
 0x3c9   :  { %v1029_v19 = vpop.eup %1028 }
 0x3ca   :  { %v314_v20 = vmul.f32 0.5, %v1029_v19  ;;  %v323_v21 = vmul.f32 %v1027_v17, %v315_v18  ;;  %v321_v25 = vmul.f32 %v315_v18, %v1241_v31  ;;  %v319_v42 = vadd.f32 0.5, %v317_v32 }
 0x3cb   :  { %v1031_v23 = vpop.eup %1030 }
 0x3cc   :  { %v316_v22 = vadd.f32 0.5, %v314_v20  ;;  %327 = vrot.lane.b32.xlu0 %v323_v21, %s1098_s6  ;;  %v318_v33 = vmul.f32 0.5, %v1031_v23 }
 0x3ce   :  { %v324_v24 = vmul.f32 %v1031_v23, %v316_v22  ;;  %v322_v28 = vmul.f32 %v316_v22, %v1244_v34  ;;  %v320_v46 = vadd.f32 0.5, %v318_v33  ;;  %v941_v34 = vld [vmem:[%s1434_s0 + $0x30] sm:$0xff] }
 0x3cf   :  { %v342_v51 = vunpack.c.l.bf16 %v941_v34  ;;  %v343_v53 = vunpack.c.h.bf16 %v941_v34 }
 0x3d0   :  { %329 = vrot.lane.b32.xlu1 %v324_v24, %s1098_s6 }
 0x3d1   :  { %v346_v54 = vadd.f32 %v342_v51, %v1140_v13  ;;  %v347_v56 = vadd.f32 %v343_v53, %v1142_v14 }
 0x43e   :  { %v328_v26 = vpop.permute.xlu0 %327 }
 0x43f   :  { %v1273_v27 = vadd.f32 %v328_v26, %v321_v25 }
 0x441   :  { %1032 = vtanh.f32 %v1273_v27 }
 0x442   :  { %v330_v29 = vpop.permute.xlu1 %329 }
 0x443   :  { %v1277_v30 = vadd.f32 %v330_v29, %v322_v28 }
 0x445   :  { %1034 = vtanh.f32 %v1277_v30 }
 0x44e   :  { %v1033_v39 = vpop.eup %1032 }
 0x44f   :  { %v337_v48 = vmul.f32 %v1033_v39, %v319_v42 }
 0x452   :  { %v1035_v47 = vpop.eup %1034 }
 0x453   :  { %v338_v31 = vmul.f32 %v1035_v47, %v320_v46 }
 0x455   :  { %v350_v49 = vpack.c.bf16 %v338_v31, %v337_v48  ;;  %v945_v31 = vld [vmem:[%s1434_s0 + $0x48] sm:$0xff] }
 0x456   :  { %v443_v34 = vunpack.c.l.bf16 %v945_v31  ;;  %v444_v52 = vunpack.c.h.bf16 %v945_v31 }
 0x457   :  { %352 = vrot.lane.b32.xlu0 %v350_v49, %s1098_s6 }
 0x4c9   :  { %v353_v50 = vpop.permute.xlu0 %352 }
 0x4ca   :  { %943 = vmatmul.mubr.msk.bf16.vlgmr.msra.gmra.mxu0 %vm147_vm1, %v353_v50 }
 0x4cb   :  { %564 = vmatpush1.bf16.msra.mxu0 %v1162_v37  ;;  %587 = vmatprep.mubr.bf16.mxu0 %v1097_v36 }
 0x4cc   :  { %565 = vmatprep.subr.bf16.mxu0 %v1168_v38 }
 0x4cf   :  { %566 = vmatpush1.bf16.msra.mxu0 %v1175_v40 }
 0x4d0   :  { %567 = vmatprep.subr.bf16.mxu0 %v1183_v41 }
 0x4d3   :  { %568 = vmatpush1.bf16.msra.mxu0 %v1190_v43 }
 0x4d4   :  { %569 = vmatprep.subr.bf16.mxu0 %v1198_v44 }
 0x4d7   :  { %570 = vmatpush1.bf16.msra.mxu0 %v1205_v45 }
 0x4d8   :  { %761 = vmatprep.subr.bf16.mxu0 %v1155_v35  ;;  %v348_v35 = vadd.f32 %v344_v55, %v1140_v13  ;;  %v447_v55 = vadd.f32 %v443_v34, %v1140_v13 }
 0x58a   :  { %v391_v58 = vpop.f32.mrf.mxu0 }
 0x58b   :  { %v400_v59 = vadd.f32 %v391_v58, %v346_v54 }
 0x58c   :  { %v393_v60 = vpop.f32.mrf.mxu0 }
 0x58d   :  { %v404_v61 = vmul.f32 0.5, %v400_v59  ;;  %v401_v62 = vadd.f32 %v393_v60, %v347_v56  ;;  %v448_v59 = vadd.f32 %v444_v52, %v1142_v14 }
 0x58e   :  { %v395_v0 = vpop.f32.mrf.mxu0 }
 0x58f   :  { %1036 = vtanh.f32 %v404_v61  ;;  %v405_v1 = vmul.f32 %v401_v62, %v1144_v16  ;;  %v402_v2 = vadd.f32 %v395_v0, %v348_v35 }
 0x590   :  { %v397_v3 = vpop.f32.mrf.mxu0 }
 0x591   :  { %v406_v4 = vmul.f32 0.5, %v402_v2  ;;  %v403_v5 = vadd.f32 %v397_v3, %v349_v63  ;;  %1038 = vtanh.f32 %v405_v1 }
 0x593   :  { %1040 = vtanh.f32 %v406_v4  ;;  %v407_v6 = vmul.f32 %v403_v5, %v1144_v16 }
 0x595   :  { %1042 = vtanh.f32 %v407_v6 }
 0x59c   :  { %v1037_v7 = vpop.eup %1036 }
 0x59d   :  { %v412_v8 = vmul.f32 0.5, %v1037_v7 }
 0x59e   :  { %v1039_v9 = vpop.eup %1038 }
 0x59f   :  { %v414_v10 = vadd.f32 0.5, %v412_v8  ;;  %v416_v26 = vmul.f32 0.5, %v1039_v9 }
 0x5a0   :  { %v1041_v11 = vpop.eup %1040 }
 0x5a1   :  { %v413_v12 = vmul.f32 0.5, %v1041_v11  ;;  %v422_v15 = vmul.f32 %v1039_v9, %v414_v10  ;;  %v420_v20 = vmul.f32 %v414_v10, %v1273_v27  ;;  %v418_v32 = vadd.f32 0.5, %v416_v26 }
 0x5a2   :  { %v1043_v18 = vpop.eup %1042 }
 0x5a3   :  { %v415_v17 = vadd.f32 0.5, %v413_v12  ;;  %426 = vrot.lane.b32.xlu1 %v422_v15, %s1098_s6  ;;  %v417_v28 = vmul.f32 0.5, %v1043_v18 }
 0x5a5   :  { %v423_v19 = vmul.f32 %v1043_v18, %v415_v17  ;;  %v421_v23 = vmul.f32 %v415_v17, %v1277_v30  ;;  %v419_v33 = vadd.f32 0.5, %v417_v28  ;;  %v944_v30 = vld [vmem:[%s1434_s0 + $0x40] sm:$0xff] }
 0x5a6   :  { %v441_v48 = vunpack.c.l.bf16 %v944_v30  ;;  %v442_v49 = vunpack.c.h.bf16 %v944_v30 }
 0x5a7   :  { %428 = vrot.lane.b32.xlu0 %v423_v19, %s1098_s6 }
 0x5a8   :  { %v445_v50 = vadd.f32 %v441_v48, %v1140_v13  ;;  %v446_v51 = vadd.f32 %v442_v49, %v1142_v14 }
 0x615   :  { %v427_v21 = vpop.permute.xlu1 %426 }
 0x616   :  { %v1306_v22 = vadd.f32 %v427_v21, %v420_v20 }
 0x618   :  { %1044 = vtanh.f32 %v1306_v22 }
 0x619   :  { %v429_v24 = vpop.permute.xlu0 %428 }
 0x61a   :  { %v1310_v25 = vadd.f32 %v429_v24, %v421_v23 }
 0x61c   :  { %1046 = vtanh.f32 %v1310_v25 }
 0x625   :  { %v1045_v29 = vpop.eup %1044 }
 0x626   :  { %v436_v42 = vmul.f32 %v1045_v29, %v418_v32 }
 0x629   :  { %v1047_v39 = vpop.eup %1046 }
 0x62a   :  { %v437_v27 = vmul.f32 %v1047_v39, %v419_v33 }
 0x62c   :  { %v449_v46 = vpack.c.bf16 %v437_v27, %v436_v42 }
 0x62e   :  { %451 = vrot.lane.b32.xlu1 %v449_v46, %s1098_s6 }
 0x6a0   :  { %v452_v47 = vpop.permute.xlu1 %451 }
 0x6a1   :  { %946 = vmatmul.mubr.msk.bf16.vlgmr.msra.gmra.mxu1 %vm147_vm1, %v452_v47 }
 0x6a2   :  { %663 = vmatpush1.bf16.msra.mxu1 %v1162_v37  ;;  %686 = vmatprep.mubr.bf16.mxu1 %v1097_v36 }
 0x6a3   :  { %664 = vmatprep.subr.bf16.mxu1 %v1168_v38 }
 0x6a6   :  { %665 = vmatpush1.bf16.msra.mxu1 %v1175_v40 }
 0x6a7   :  { %666 = vmatprep.subr.bf16.mxu1 %v1183_v41 }
 0x6aa   :  { %667 = vmatpush1.bf16.msra.mxu1 %v1190_v43 }
 0x6ab   :  { %668 = vmatprep.subr.bf16.mxu1 %v1198_v44 }
 0x6ae   :  { %669 = vmatpush1.bf16.msra.mxu1 %v1205_v45 }
 0x761   :  { %v490_v53 = vpop.f32.mrf.mxu1 }
 0x762   :  { %v499_v54 = vadd.f32 %v490_v53, %v445_v50 }
 0x763   :  { %v492_v56 = vpop.f32.mrf.mxu1 }
 0x764   :  { %v503_v57 = vmul.f32 0.5, %v499_v54  ;;  %v500_v58 = vadd.f32 %v492_v56, %v446_v51 }
 0x765   :  { %v494_v35 = vpop.f32.mrf.mxu1 }
 0x766   :  { %1048 = vtanh.f32 %v503_v57  ;;  %v504_v60 = vmul.f32 %v500_v58, %v1144_v16  ;;  %v501_v61 = vadd.f32 %v494_v35, %v447_v55 }
 0x767   :  { %v496_v62 = vpop.f32.mrf.mxu1 }
 0x768   :  { %v505_v63 = vmul.f32 0.5, %v501_v61  ;;  %v502_v0 = vadd.f32 %v496_v62, %v448_v59  ;;  %1050 = vtanh.f32 %v504_v60 }
 0x76a   :  { %1052 = vtanh.f32 %v505_v63  ;;  %v506_v1 = vmul.f32 %v502_v0, %v1144_v16 }
 0x76c   :  { %1054 = vtanh.f32 %v506_v1 }
 0x773   :  { %v1049_v2 = vpop.eup %1048 }
 0x774   :  { %v511_v3 = vmul.f32 0.5, %v1049_v2 }
 0x775   :  { %v1051_v4 = vpop.eup %1050 }
 0x776   :  { %v513_v5 = vadd.f32 0.5, %v511_v3  ;;  %v515_v21 = vmul.f32 0.5, %v1051_v4 }
 0x777   :  { %v1053_v6 = vpop.eup %1052 }
 0x778   :  { %v512_v7 = vmul.f32 0.5, %v1053_v6  ;;  %v521_v8 = vmul.f32 %v1051_v4, %v513_v5  ;;  %v519_v12 = vmul.f32 %v513_v5, %v1306_v22  ;;  %v517_v26 = vadd.f32 0.5, %v515_v21 }
 0x779   :  { %v1055_v10 = vpop.eup %1054 }
 0x77a   :  { %v514_v9 = vadd.f32 0.5, %v512_v7  ;;  %525 = vrot.lane.b32.xlu0 %v521_v8, %s1098_s6  ;;  %v516_v23 = vmul.f32 0.5, %v1055_v10 }
 0x77c   :  { %v522_v11 = vmul.f32 %v1055_v10, %v514_v9  ;;  %v520_v18 = vmul.f32 %v514_v9, %v1310_v25  ;;  %v518_v28 = vadd.f32 0.5, %v516_v23  ;;  %v947_v25 = vld [vmem:[%s1434_s0 + $0x50] sm:$0xff] }
 0x77d   :  { %v540_v42 = vunpack.c.l.bf16 %v947_v25 }
 0x77e   :  { %527 = vrot.lane.b32.xlu1 %v522_v11, %s1098_s6 }
 0x7ec   :  { %v526_v15 = vpop.permute.xlu0 %525 }
 0x7ed   :  { %v1338_v17 = vadd.f32 %v526_v15, %v519_v12 }
 0x7ef   :  { %1056 = vtanh.f32 %v1338_v17 }
 0x7f0   :  { %v528_v19 = vpop.permute.xlu1 %527 }
 0x7f1   :  { %v1342_v20 = vadd.f32 %v528_v19, %v520_v18  ;;  %v950_v18 = vld [vmem:[%s1434_s0 + $0x60] sm:$0xff] }
 0x7f2   :  { %v639_v19 = vunpack.c.l.bf16 %v950_v18  ;;  %v640_v21 = vunpack.c.h.bf16 %v950_v18 }
 0x7f3   :  { %1058 = vtanh.f32 %v1342_v20 }
 0x7f4   :  { %v643_v23 = vadd.f32 %v639_v19, %v1140_v13 }
 0x7fc   :  { %v1057_v24 = vpop.eup %1056 }
 0x7fd   :  { %v535_v32 = vmul.f32 %v1057_v24, %v517_v26  ;;  %v644_v26 = vadd.f32 %v640_v21, %v1142_v14 }
 0x800   :  { %v1059_v29 = vpop.eup %1058 }
 0x801   :  { %v536_v22 = vmul.f32 %v1059_v29, %v518_v28 }
 0x803   :  { %v548_v33 = vpack.c.bf16 %v536_v22, %v535_v32 }
 0x805   :  { %550 = vrot.lane.b32.xlu0 %v548_v33, %s1098_s6 }
 0x877   :  { %v551_v39 = vpop.permute.xlu0 %550 }
 0x878   :  { %949 = vmatmul.mubr.msk.bf16.vlgmr.msra.gmra.mxu0 %vm147_vm1, %v551_v39 }
 0x879   :  { %762 = vmatpush1.bf16.msra.mxu0 %v1162_v37  ;;  %785 = vmatprep.mubr.bf16.mxu0 %v1097_v36  ;;  %v948_v36 = vld [vmem:[%s1434_s0 + $0x58] sm:$0xff]  ;;  %v541_v37 = vunpack.c.h.bf16 %v947_v25 }
 0x87a   :  { %763 = vmatprep.subr.bf16.mxu0 %v1168_v38  ;;  %v544_v38 = vadd.f32 %v540_v42, %v1140_v13 }
 0x87d   :  { %764 = vmatpush1.bf16.msra.mxu0 %v1175_v40  ;;  %v542_v40 = vunpack.c.l.bf16 %v948_v36 }
 0x87e   :  { %765 = vmatprep.subr.bf16.mxu0 %v1183_v41  ;;  %v545_v41 = vadd.f32 %v541_v37, %v1142_v14 }
 0x881   :  { %766 = vmatpush1.bf16.msra.mxu0 %v1190_v43  ;;  %v543_v43 = vunpack.c.h.bf16 %v948_v36 }
 0x882   :  { %767 = vmatprep.subr.bf16.mxu0 %v1198_v44 }
 0x883   :  { %v547_v48 = vadd.f32 %v543_v43, %v1142_v14 }
 0x885   :  { %768 = vmatpush1.bf16.msra.mxu0 %v1205_v45  ;;  %v546_v45 = vadd.f32 %v542_v40, %v1140_v13 }
 0x938   :  { %v589_v27 = vpop.f32.mrf.mxu0 }
 0x939   :  { %v598_v44 = vadd.f32 %v589_v27, %v544_v38 }
 0x93a   :  { %v591_v46 = vpop.f32.mrf.mxu0 }
 0x93b   :  { %v602_v47 = vmul.f32 0.5, %v598_v44  ;;  %v599_v30 = vadd.f32 %v591_v46, %v545_v41 }
 0x93c   :  { %v593_v31 = vpop.f32.mrf.mxu0 }
 0x93d   :  { %1060 = vtanh.f32 %v602_v47  ;;  %v603_v49 = vmul.f32 %v599_v30, %v1144_v16  ;;  %v600_v50 = vadd.f32 %v593_v31, %v546_v45 }
 0x93e   :  { %v595_v34 = vpop.f32.mrf.mxu0 }
 0x93f   :  { %v604_v51 = vmul.f32 0.5, %v600_v50  ;;  %v601_v52 = vadd.f32 %v595_v34, %v547_v48  ;;  %1062 = vtanh.f32 %v603_v49 }
 0x941   :  { %1064 = vtanh.f32 %v604_v51  ;;  %v605_v53 = vmul.f32 %v601_v52, %v1144_v16 }
 0x943   :  { %1066 = vtanh.f32 %v605_v53 }
 0x94a   :  { %v1061_v54 = vpop.eup %1060 }
 0x94b   :  { %v610_v55 = vmul.f32 0.5, %v1061_v54 }
 0x94c   :  { %v1063_v56 = vpop.eup %1062 }
 0x94d   :  { %v612_v57 = vadd.f32 0.5, %v610_v55  ;;  %v614_v5 = vmul.f32 0.5, %v1063_v56 }
 0x94e   :  { %v1065_v58 = vpop.eup %1064 }
 0x94f   :  { %v611_v59 = vmul.f32 0.5, %v1065_v58  ;;  %v620_v35 = vmul.f32 %v1063_v56, %v612_v57  ;;  %v618_v63 = vmul.f32 %v612_v57, %v1338_v17  ;;  %v616_v8 = vadd.f32 0.5, %v614_v5 }
 0x950   :  { %v1067_v61 = vpop.eup %1066 }
 0x951   :  { %v613_v60 = vadd.f32 0.5, %v611_v59  ;;  %624 = vrot.lane.b32.xlu1 %v620_v35, %s1098_s6  ;;  %v615_v6 = vmul.f32 0.5, %v1067_v61 }
 0x953   :  { %v621_v62 = vmul.f32 %v1067_v61, %v613_v60  ;;  %v619_v2 = vmul.f32 %v613_v60, %v1342_v20  ;;  %v617_v9 = vadd.f32 0.5, %v615_v6  ;;  %v951_v20 = vld [vmem:[%s1434_s0 + $0x68] sm:$0xff] }
 0x954   :  { %v641_v24 = vunpack.c.l.bf16 %v951_v20  ;;  %v642_v28 = vunpack.c.h.bf16 %v951_v20 }
 0x955   :  { %626 = vrot.lane.b32.xlu0 %v621_v62, %s1098_s6 }
 0x956   :  { %v645_v22 = vadd.f32 %v641_v24, %v1140_v13  ;;  %v646_v42 = vadd.f32 %v642_v28, %v1142_v14 }
 0x9c3   :  { %v625_v0 = vpop.permute.xlu1 %624 }
 0x9c4   :  { %v630_v1 = vadd.f32 %v625_v0, %v618_v63 }
 0x9c6   :  { %1068 = vtanh.f32 %v630_v1 }
 0x9c7   :  { %v627_v3 = vpop.permute.xlu0 %626 }
 0x9c8   :  { %v631_v4 = vadd.f32 %v627_v3, %v619_v2  ;;  %v953_v2 = vld [vmem:[%s1434_s0 + $0x70] sm:$0xff] }
 0x9c9   :  { %v738_v3 = vunpack.c.l.bf16 %v953_v2  ;;  %v739_v5 = vunpack.c.h.bf16 %v953_v2 }
 0x9ca   :  { %1070 = vtanh.f32 %v631_v4 }
 0x9cb   :  { %v742_v6 = vadd.f32 %v738_v3, %v1140_v13 }
 0x9d3   :  { %v1069_v7 = vpop.eup %1068 }
 0x9d4   :  { %v634_v11 = vmul.f32 %v1069_v7, %v616_v8  ;;  %v743_v8 = vadd.f32 %v739_v5, %v1142_v14 }
 0x9d7   :  { %v1071_v10 = vpop.eup %1070 }
 0x9d8   :  { %v635_v12 = vmul.f32 %v1071_v10, %v617_v9 }
 0x9da   :  { %v647_v15 = vpack.c.bf16 %v635_v12, %v634_v11 }
 0x9dc   :  { %649 = vrot.lane.b32.xlu1 %v647_v15, %s1098_s6 }
 0xa4e   :  { %v650_v17 = vpop.permute.xlu1 %649 }
 0xa4f   :  { %952 = vmatmul.mubr.msk.bf16.vlgmr.msra.gmra.mxu1 %vm147_vm1, %v650_v17 }
 0xb0f   :  { %v688_v29 = vpop.f32.mrf.mxu1 }
 0xb10   :  { %v697_v32 = vadd.f32 %v688_v29, %v643_v23 }
 0xb11   :  { %v690_v33 = vpop.f32.mrf.mxu1 }
 0xb12   :  { %v701_v39 = vmul.f32 0.5, %v697_v32  ;;  %v698_v25 = vadd.f32 %v690_v33, %v644_v26 }
 0xb13   :  { %v692_v36 = vpop.f32.mrf.mxu1 }
 0xb14   :  { %1072 = vtanh.f32 %v701_v39  ;;  %v702_v37 = vmul.f32 %v698_v25, %v1144_v16  ;;  %v699_v38 = vadd.f32 %v692_v36, %v645_v22 }
 0xb15   :  { %v694_v40 = vpop.f32.mrf.mxu1 }
 0xb16   :  { %v703_v41 = vmul.f32 0.5, %v699_v38  ;;  %v700_v43 = vadd.f32 %v694_v40, %v646_v42  ;;  %1074 = vtanh.f32 %v702_v37  ;;  %v1099_v38 = vmov 0.0   ;;  %v997_v40 = vld [vmem:[%s1437_s3 + $0x10] sm:$0xff]  }
 0xb17   :  { %967 = vmatprep.subr.bf16.mxu1 %v1099_v38  ;;  %975 = vmatprep.mubr.msk.bf16.mxu1 %vm1100_vm2, %v1099_v38 }
 0xb18   :  { %1076 = vtanh.f32 %v703_v41  ;;  %v704_v27 = vmul.f32 %v700_v43, %v1144_v16  ;;  %v998_v41 = vld [vmem:[%s1437_s3 + $0x8] sm:$0xff]   ;;  %v999_v43 = vld [vmem:[%s1437_s3] sm:$0xff]  }
 0xb1a   :  { %1078 = vtanh.f32 %v704_v27 }
 0xb21   :  { %v1073_v44 = vpop.eup %1072 }
 0xb22   :  { %v709_v45 = vmul.f32 0.5, %v1073_v44 }
 0xb23   :  { %v1075_v46 = vpop.eup %1074 }
 0xb24   :  { %v711_v47 = vadd.f32 0.5, %v709_v45  ;;  %v713_v57 = vmul.f32 0.5, %v1075_v46 }
 0xb25   :  { %v1077_v30 = vpop.eup %1076 }
 0xb26   :  { %v710_v48 = vmul.f32 0.5, %v1077_v30  ;;  %v719_v31 = vmul.f32 %v1075_v46, %v711_v47  ;;  %v717_v51 = vmul.f32 %v711_v47, %v630_v1  ;;  %v715_v35 = vadd.f32 0.5, %v713_v57 }
 0xb27   :  { %v1079_v50 = vpop.eup %1078 }
 0xb28   :  { %v712_v49 = vadd.f32 0.5, %v710_v48  ;;  %723 = vrot.lane.b32.xlu0 %v719_v31, %s1098_s6  ;;  %v714_v58 = vmul.f32 0.5, %v1079_v50 }
 0xb2a   :  { %v720_v34 = vmul.f32 %v1079_v50, %v712_v49  ;;  %v718_v54 = vmul.f32 %v712_v49, %v631_v4  ;;  %v716_v60 = vadd.f32 0.5, %v714_v58  ;;  %v954_v4 = vld [vmem:[%s1434_s0 + $0x78] sm:$0xff] }
 0xb2b   :  { %v740_v7 = vunpack.c.l.bf16 %v954_v4  ;;  %v741_v9 = vunpack.c.h.bf16 %v954_v4 }
 0xb2c   :  { %725 = vrot.lane.b32.xlu1 %v720_v34, %s1098_s6 }
 0xb2d   :  { %v744_v12 = vadd.f32 %v740_v7, %v1140_v13  ;;  %v745_v19 = vadd.f32 %v741_v9, %v1142_v14 }
 0xb9a   :  { %v724_v52 = vpop.permute.xlu0 %723 }
 0xb9b   :  { %v1387_v53 = vadd.f32 %v724_v52, %v717_v51 }
 0xb9d   :  { %1080 = vtanh.f32 %v1387_v53 }
 0xb9e   :  { %v726_v55 = vpop.permute.xlu1 %725 }
 0xb9f   :  { %v1390_v56 = vadd.f32 %v726_v55, %v718_v54 }
 0xba1   :  { %1082 = vtanh.f32 %v1390_v56 }
 0xbaa   :  { %v1081_v59 = vpop.eup %1080 }
 0xbab   :  { %v733_v62 = vmul.f32 %v1081_v59, %v715_v35 }
 0xbae   :  { %v1083_v61 = vpop.eup %1082 }
 0xbaf   :  { %v734_v63 = vmul.f32 %v1083_v61, %v716_v60 }
 0xbb1   :  { %v746_v0 = vpack.c.bf16 %v734_v63, %v733_v62 }
 0xbb3   :  { %748 = vrot.lane.b32.xlu0 %v746_v0, %s1098_s6 }
 0xc25   :  { %v749_v1 = vpop.permute.xlu0 %748 }
 0xc26   :  { %955 = vmatmul.mubr.msk.bf16.vlgmr.msra.gmra.mxu0 %vm147_vm1, %v749_v1 }
 0xce6   :  { %v787_v10 = vpop.f32.mrf.mxu0 }
 0xce7   :  { %v796_v11 = vadd.f32 %v787_v10, %v742_v6 }
 0xce8   :  { %v789_v15 = vpop.f32.mrf.mxu0 }
 0xce9   :  { %v800_v17 = vmul.f32 0.5, %v796_v11  ;;  %v797_v18 = vadd.f32 %v789_v15, %v743_v8 }
 0xcea   :  { %v791_v20 = vpop.f32.mrf.mxu0 }
 0xceb   :  { %1084 = vtanh.f32 %v800_v17  ;;  %v801_v21 = vmul.f32 %v797_v18, %v1144_v16  ;;  %v798_v23 = vadd.f32 %v791_v20, %v744_v12 }
 0xcec   :  { %v793_v24 = vpop.f32.mrf.mxu0 }
 0xced   :  { %v802_v26 = vmul.f32 0.5, %v798_v23  ;;  %v799_v28 = vadd.f32 %v793_v24, %v745_v19  ;;  %1086 = vtanh.f32 %v801_v21 }
 0xcef   :  { %1088 = vtanh.f32 %v802_v26  ;;  %v803_v29 = vmul.f32 %v799_v28, %v1144_v16  ;;  %v996_v16 = vld [vmem:[%s1437_s3 + $0x18] sm:$0xff]  }
 0xcf0   :  { %968 = vmatpush3.bf16.msra.mxu1 %v996_v16 }
 0xcf1   :  { %1090 = vtanh.f32 %v803_v29  ;;  %969 = vmatprep.subr.bf16.mxu1 %v1099_v38 }
 0xcf4   :  { %970 = vmatpush3.bf16.msra.mxu1 %v997_v40 }
 0xcf5   :  { %971 = vmatprep.subr.bf16.mxu1 %v1099_v38 }
 0xcf8   :  { %v1085_v32 = vpop.eup %1084  ;;  %972 = vmatpush3.bf16.msra.mxu1 %v998_v41 }
 0xcf9   :  { %v808_v13 = vmul.f32 0.5, %v1085_v32  ;;  %973 = vmatprep.subr.bf16.mxu1 %v1099_v38 }
 0xcfa   :  { %v1087_v22 = vpop.eup %1086 }
 0xcfb   :  { %v810_v33 = vadd.f32 0.5, %v808_v13  ;;  %v812_v48 = vmul.f32 0.5, %v1087_v22 }
 0xcfc   :  { %v1089_v39 = vpop.eup %1088  ;;  %974 = vmatpush3.bf16.msra.mxu1 %v999_v43 }
 0xcfd   :  { %v809_v25 = vmul.f32 0.5, %v1089_v39  ;;  %v818_v14 = vmul.f32 %v1087_v22, %v810_v33  ;;  %v816_v27 = vmul.f32 %v810_v33, %v1387_v53  ;;  %v814_v49 = vadd.f32 0.5, %v812_v48 }
 0xcfe   :  { %v1091_v36 = vpop.eup %1090 }
 0xcff   :  { %v811_v42 = vadd.f32 0.5, %v809_v25  ;;  %822 = vrot.lane.b32.xlu1 %v818_v14, %s1098_s6  ;;  %v813_v31 = vmul.f32 0.5, %v1091_v36 }
 0xd01   :  { %v819_v37 = vmul.f32 %v1091_v36, %v811_v42  ;;  %v817_v46 = vmul.f32 %v811_v42, %v1390_v56  ;;  %v815_v51 = vadd.f32 0.5, %v813_v31  ;;  %v956_v56 = vld [vmem:[%s1438_s4] ss:$0 sm:$0xff] }
 0xd03   :  { %824 = vrot.lane.b32.xlu0 %v819_v37, %s1098_s6 }
 0xd71   :  { %v823_v44 = vpop.permute.xlu1 %822 }
 0xd72   :  { %v828_v45 = vadd.f32 %v823_v44, %v816_v27 }
 0xd74   :  { %1092 = vtanh.f32 %v828_v45 }
 0xd75   :  { %v825_v47 = vpop.permute.xlu0 %824 }
 0xd76   :  { %v829_v30 = vadd.f32 %v825_v47, %v817_v46 }
 0xd78   :  { %1094 = vtanh.f32 %v829_v30 }
 0xd81   :  { %v1093_v50 = vpop.eup %1092 }
 0xd82   :  { %v832_v34 = vmul.f32 %v1093_v50, %v814_v49 }
 0xd85   :  { %v1095_v52 = vpop.eup %1094 }
 0xd86   :  { %v833_v54 = vmul.f32 %v1095_v52, %v815_v51 }
 0xd88   :  { %v834_v55 = vpack.c.bf16 %v833_v54, %v832_v34 }
 0xd8a   :  { %851 = vrot.lane.b32.xlu1 %v834_v55, %s1098_s6 }
 0xdfc   :  { %v852_v53 = vpop.permute.xlu1 %851 }
 0xdfd   :  { %976 = vmatmul.mubr.msk.bf16.vlgmr.msra.gmra.mxu1 %vm147_vm1, %v852_v53 }
 0xebd   :  { %v914_v57 = vpop.f32.mrf.mxu1 }
 0xebe   :  { %v915_v58 = vadd.f32 %v956_v56, %v914_v57 }
 0xebf   :  { %v977_v59 = vpop.f32.mrf.mxu1 }
 0xec0   :  { %921 = vst [vmem:[%s1439_s5] sm:$0xff] %v915_v58 }
 0xec1   :  { %v917_v35 = vpop.f32.mrf.mxu1 }
 0xec2   :  { %v918_v60 = vadd.f32 %v956_v56, %v917_v35 }
 0xec3   :  { %v978_v61 = vpop.f32.mrf.mxu1 }
 0xec4   :  { %922 = vst [vmem:[%s1439_s5 + $0x8] sm:$0xff] %v918_v60 }

</bundles_post_ra>
